<compile_context>
chip_gen: v5e
topology: v5e:2x2
jax: 0.10.0
libtpu: 0.0.40
codegen_flags: <defaults>
</compile_context>

<pallas_src>
import jax
import jax.numpy as jnp
from jax import lax
from jax.experimental import pallas as pl
from jax.experimental.pallas import tpu as pltpu


def feedforward_kernel(x_ref, w1_ref, w3_ref, w2_ref, o_ref, acc_ref):
    # x_ref:   (TM, dim)
    # w1_ref:  (TH, dim)   -- w1 tile, PyTorch (out, in) layout
    # w3_ref:  (TH, dim)   -- w3 tile, PyTorch (out, in) layout
    # w2_ref:  (dim, TH)   -- w2 tile, PyTorch (out, in) layout
    # o_ref:   (TM, dim)
    # acc_ref: (TM, dim) f32 scratch, resident across the hidden (reduction) axis
    h = pl.program_id(1)

    @pl.when(h == 0)
    def _():
        acc_ref[...] = jnp.zeros_like(acc_ref)

    x = x_ref[...]

    # h1 = x @ w1_tile.T ; h3 = x @ w3_tile.T   (contract last dims of both)
    dn = (((1,), (1,)), ((), ()))
    h1 = lax.dot_general(x, w1_ref[...], dn, preferred_element_type=jnp.float32)
    h3 = lax.dot_general(x, w3_ref[...], dn, preferred_element_type=jnp.float32)

    # SiLU gate in f32: swish(h1) * h3
    gated = (h1 * jax.nn.sigmoid(h1)) * h3

    # acc += gated @ w2_tile.T    (w2_tile is (dim, TH); contract the TH axis)
    acc_ref[...] += lax.dot_general(
        gated.astype(w2_ref.dtype), w2_ref[...], dn,
        preferred_element_type=jnp.float32)

    @pl.when(h == pl.num_programs(1) - 1)
    def _():
        o_ref[...] = acc_ref[...].astype(o_ref.dtype)


def _pick_tile(total, preferred):
    for t in preferred:
        if t <= total and total % t == 0:
            return t
    return total  # fall back to full extent (always legal for BlockSpec)


def feedforward(x, w1, w2, w3, *, tm=None, th=None):
    """SwiGLU feed-forward.

    x:       (..., dim)
    w1, w3:  (hidden, dim)  -- PyTorch nn.Linear weight layout (out, in)
    w2:      (dim, hidden)
    """
    orig_shape = x.shape
    dim = orig_shape[-1]
    hidden = w1.shape[0]
    assert w1.shape == (hidden, dim)
    assert w3.shape == (hidden, dim)
    assert w2.shape == (dim, hidden)

    x2d = x.reshape(-1, dim)
    M = x2d.shape[0]

    if tm is None:
        tm = _pick_tile(M, (512, 256, 128))
    if th is None:
        th = _pick_tile(hidden, (2048, 1024, 512, 256, 128))
    assert M % tm == 0 and hidden % th == 0

    grid = (M // tm, hidden // th)

    # VMEM budget estimate: double-buffered input/output tiles + f32 accumulator.
    itemsize = jnp.dtype(x.dtype).itemsize
    tile_bytes = (tm * dim + 2 * th * dim + dim * th + tm * dim) * itemsize
    vmem_needed = 2 * tile_bytes + tm * dim * 4
    vmem_limit = None
    if vmem_needed > 24 * 1024 * 1024:
        # leave headroom but stay well under physical VMEM (64 MiB on v7x).
        vmem_limit = min(int(vmem_needed * 1.5), 60 * 1024 * 1024)

    out2d = pl.pallas_call(
        feedforward_kernel,
        out_shape=jax.ShapeDtypeStruct((M, dim), x.dtype),
        grid_spec=pltpu.PrefetchScalarGridSpec(
            num_scalar_prefetch=0,
            grid=grid,
            in_specs=[
                pl.BlockSpec((tm, dim), lambda i, h: (i, 0)),   # x rows
                pl.BlockSpec((th, dim), lambda i, h: (h, 0)),   # w1 tile
                pl.BlockSpec((th, dim), lambda i, h: (h, 0)),   # w3 tile
                pl.BlockSpec((dim, th), lambda i, h: (0, h)),   # w2 tile
            ],
            out_specs=pl.BlockSpec((tm, dim), lambda i, h: (i, 0)),
            scratch_shapes=[pltpu.VMEM((tm, dim), jnp.float32)],
        ),
        compiler_params=pltpu.CompilerParams(
            dimension_semantics=("parallel", "arbitrary"),
            vmem_limit_bytes=vmem_limit,
        ),
    )(x2d, w1, w3, w2)

    return out2d.reshape(orig_shape)


def feedforward_ref(x, w1, w2, w3):
    h1 = x @ w1.T
    h3 = x @ w3.T
    return ((h1 * jax.nn.sigmoid(h1)) * h3) @ w2.T


if __name__ == "__main__":
    key = jax.random.PRNGKey(0)

    # ---- Small demo at module-implied shapes (single grid step, full blocks).
    batch, seq, dim, hidden = 2, 8, 32, 64
    kx, k1, k2, k3 = jax.random.split(key, 4)
    x = jax.random.normal(kx, (batch, seq, dim), dtype=jnp.float32)
    w1 = jax.random.uniform(k1, (hidden, dim), jnp.float32, -1.0, 1.0) / jnp.sqrt(dim)
    w2 = jax.random.uniform(k2, (dim, hidden), jnp.float32, -1.0, 1.0) / jnp.sqrt(hidden)
    w3 = jax.random.uniform(k3, (hidden, dim), jnp.float32, -1.0, 1.0) / jnp.sqrt(dim)

    y = feedforward(x, w1, w2, w3)
    jax.block_until_ready(y)
    y_ref = feedforward_ref(x, w1, w2, w3)
    assert y.shape == x.shape
    assert jnp.allclose(y, y_ref, atol=1e-4, rtol=1e-4), "f32 small-shape mismatch"

    # ---- Tiled path: multiple grid steps along both M and hidden (f32).
    b2, s2, d2, h2 = 2, 128, 128, 512
    kx2, k12, k22, k32 = jax.random.split(jax.random.PRNGKey(1), 4)
    x2 = jax.random.normal(kx2, (b2, s2, d2), dtype=jnp.float32)
    w1b = jax.random.uniform(k12, (h2, d2), jnp.float32, -1.0, 1.0) / jnp.sqrt(d2)
    w2b = jax.random.uniform(k22, (d2, h2), jnp.float32, -1.0, 1.0) / jnp.sqrt(h2)
    w3b = jax.random.uniform(k32, (h2, d2), jnp.float32, -1.0, 1.0) / jnp.sqrt(d2)

    y2 = feedforward(x2, w1b, w2b, w3b, tm=128, th=256)  # grid = (2, 2)
    jax.block_until_ready(y2)
    y2_ref = feedforward_ref(x2, w1b, w2b, w3b)
    assert jnp.allclose(y2, y2_ref, atol=1e-3, rtol=1e-3), "f32 tiled mismatch"

    # ---- bf16 MXU path (f32 accumulation inside the kernel).
    bf = jnp.bfloat16
    y3 = feedforward(x2.astype(bf), w1b.astype(bf), w2b.astype(bf), w3b.astype(bf),
                     tm=128, th=256)
    jax.block_until_ready(y3)
    y3_ref = feedforward_ref(x2.astype(bf).astype(jnp.float32),
                             w1b.astype(bf).astype(jnp.float32),
                             w2b.astype(bf).astype(jnp.float32),
                             w3b.astype(bf).astype(jnp.float32))
    assert jnp.allclose(y3.astype(jnp.float32), y3_ref, atol=5e-2, rtol=5e-2), \
        "bf16 tiled mismatch"

    print("KERNEL_OK")
</pallas_src>

<mosaic_0001>
module attributes {stable_mosaic.version = 11 : i64} {
  func.func @feedforward_kernel(%arg0: i32, %arg1: i32, %arg2: memref<16x32xf32, #tpu.memory_space<vmem>>, %arg3: memref<64x32xf32, #tpu.memory_space<vmem>>, %arg4: memref<64x32xf32, #tpu.memory_space<vmem>>, %arg5: memref<32x64xf32, #tpu.memory_space<vmem>>, %arg6: memref<16x32xf32, #tpu.memory_space<vmem>>, %arg7: memref<16x32xf32, #tpu.memory_space<vmem>>) attributes {dimension_semantics = [#tpu.dimension_semantics<parallel>, #tpu.dimension_semantics<arbitrary>], iteration_bounds = array<i64: 1, 1>, scalar_prefetch = 0 : i64, scratch_operands = 1 : i64, tpu.core_type = #tpu.core_type<tc>, window_params = [{transform_indices = @transform_0, window_bounds = array<i64: 16, 32>}, {transform_indices = @transform_1, window_bounds = array<i64: 64, 32>}, {transform_indices = @transform_2, window_bounds = array<i64: 64, 32>}, {transform_indices = @transform_3, window_bounds = array<i64: 32, 64>}, {transform_indices = @transform_4, window_bounds = array<i64: 16, 32>}]} {
    %c0_i32 = arith.constant 0 : i32
    %0 = arith.cmpi eq, %arg1, %c0_i32 : i32
    %1 = arith.extui %0 : i1 to i32
    %c0_i32_0 = arith.constant 0 : i32
    %2 = arith.cmpi ne, %1, %c0_i32_0 : i32
    scf.if %2 {
      %cst_17 = arith.constant 0.000000e+00 : f32
      %23 = vector.broadcast %cst_17 : f32 to vector<16x32xf32>
      %c0_18 = arith.constant 0 : index
      %c0_19 = arith.constant 0 : index
      %24 = vector.load %arg7[%c0_18, %c0_19] : memref<16x32xf32, #tpu.memory_space<vmem>>, vector<16x32xf32>
      tpu.vector_store %arg7[%c0_18, %c0_19], %23 {strides = array<i32>} : memref<16x32xf32, #tpu.memory_space<vmem>>, vector<16x32xf32>,
    } else {
    }
    %c0 = arith.constant 0 : index
    %c0_1 = arith.constant 0 : index
    %3 = vector.load %arg2[%c0, %c0_1] : memref<16x32xf32, #tpu.memory_space<vmem>>, vector<16x32xf32>
    %c0_2 = arith.constant 0 : index
    %c0_3 = arith.constant 0 : index
    %4 = vector.load %arg3[%c0_2, %c0_3] : memref<64x32xf32, #tpu.memory_space<vmem>>, vector<64x32xf32>
    %cst = arith.constant dense<0.000000e+00> : vector<16x64xf32>
    %5 = tpu.matmul %3, %4, %cst {dimension_numbers = #tpu.dot_dimension_numbers<[1], [1], [0], [0], [0, 0, 1, 0], [], []>} : vector<16x32xf32>, vector<64x32xf32>, vector<16x64xf32> -> vector<16x64xf32>
    %c0_4 = arith.constant 0 : index
    %c0_5 = arith.constant 0 : index
    %6 = vector.load %arg4[%c0_4, %c0_5] : memref<64x32xf32, #tpu.memory_space<vmem>>, vector<64x32xf32>
    %cst_6 = arith.constant dense<0.000000e+00> : vector<16x64xf32>
    %7 = tpu.matmul %3, %6, %cst_6 {dimension_numbers = #tpu.dot_dimension_numbers<[1], [1], [0], [0], [0, 0, 1, 0], [], []>} : vector<16x32xf32>, vector<64x32xf32>, vector<16x64xf32> -> vector<16x64xf32>
    %8 = arith.negf %5 : vector<16x64xf32>
    %9 = math.exp %8 : vector<16x64xf32>
    %cst_7 = arith.constant 1.000000e+00 : f32
    %10 = vector.broadcast %cst_7 : f32 to vector<16x64xf32>
    %11 = arith.addf %10, %9 : vector<16x64xf32>
    %12 = arith.divf %10, %11 : vector<16x64xf32>
    %13 = arith.mulf %5, %12 : vector<16x64xf32>
    %14 = arith.mulf %13, %7 : vector<16x64xf32>
    %c0_8 = arith.constant 0 : index
    %c0_9 = arith.constant 0 : index
    %15 = vector.load %arg7[%c0_8, %c0_9] : memref<16x32xf32, #tpu.memory_space<vmem>>, vector<16x32xf32>
    %c0_10 = arith.constant 0 : index
    %c0_11 = arith.constant 0 : index
    %16 = vector.load %arg5[%c0_10, %c0_11] : memref<32x64xf32, #tpu.memory_space<vmem>>, vector<32x64xf32>
    %cst_12 = arith.constant dense<0.000000e+00> : vector<16x32xf32>
    %17 = tpu.matmul %14, %16, %cst_12 {dimension_numbers = #tpu.dot_dimension_numbers<[1], [1], [0], [0], [0, 0, 1, 0], [], []>} : vector<16x64xf32>, vector<32x64xf32>, vector<16x32xf32> -> vector<16x32xf32>
    %18 = arith.addf %15, %17 : vector<16x32xf32>
    %c0_13 = arith.constant 0 : index
    %c0_14 = arith.constant 0 : index
    %19 = vector.load %arg7[%c0_13, %c0_14] : memref<16x32xf32, #tpu.memory_space<vmem>>, vector<16x32xf32>
    tpu.vector_store %arg7[%c0_13, %c0_14], %18 {strides = array<i32>} : memref<16x32xf32, #tpu.memory_space<vmem>>, vector<16x32xf32>,
    %c0_i32_15 = arith.constant 0 : i32
    %20 = arith.cmpi eq, %arg1, %c0_i32_15 : i32
    %21 = arith.extui %20 : i1 to i32
    %c0_i32_16 = arith.constant 0 : i32
    %22 = arith.cmpi ne, %21, %c0_i32_16 : i32
    scf.if %22 {
      %c0_17 = arith.constant 0 : index
      %c0_18 = arith.constant 0 : index
      %23 = vector.load %arg7[%c0_17, %c0_18] : memref<16x32xf32, #tpu.memory_space<vmem>>, vector<16x32xf32>
      %c0_19 = arith.constant 0 : index
      %c0_20 = arith.constant 0 : index
      %24 = vector.load %arg6[%c0_19, %c0_20] : memref<16x32xf32, #tpu.memory_space<vmem>>, vector<16x32xf32>
      tpu.vector_store %arg6[%c0_19, %c0_20], %23 {strides = array<i32>} : memref<16x32xf32, #tpu.memory_space<vmem>>, vector<16x32xf32>,
    } else {
    }
    return
  }
  func.func @transform_0(%arg0: i32, %arg1: i32) -> (i32, i32) {
    %c0_i32 = arith.constant 0 : i32
    %c0_i32_0 = arith.constant 0 : i32
    return %arg0, %c0_i32 : i32, i32
  }
  func.func @transform_1(%arg0: i32, %arg1: i32) -> (i32, i32) {
    %c0_i32 = arith.constant 0 : i32
    %c0_i32_0 = arith.constant 0 : i32
    return %arg1, %c0_i32 : i32, i32
  }
  func.func @transform_2(%arg0: i32, %arg1: i32) -> (i32, i32) {
    %c0_i32 = arith.constant 0 : i32
    %c0_i32_0 = arith.constant 0 : i32
    return %arg1, %c0_i32 : i32, i32
  }
  func.func @transform_3(%arg0: i32, %arg1: i32) -> (i32, i32) {
    %c0_i32 = arith.constant 0 : i32
    %c0_i32_0 = arith.constant 0 : i32
    return %c0_i32, %arg1 : i32, i32
  }
  func.func @transform_4(%arg0: i32, %arg1: i32) -> (i32, i32) {
    %c0_i32 = arith.constant 0 : i32
    %c0_i32_0 = arith.constant 0 : i32
    return %arg0, %c0_i32 : i32, i32
  }
}

</mosaic_0001>

<bundles_post_ra>
// kernel: tpu_custom_call.1
= control target key start
LH: loop header
LB: loop body
LE: loop exit
PB: predicated region body
PF: predicated region fallthrough
CT: control target
= control target key end

     0   :  { %vm22_vm0 = vcmask 261120   ;;  %s475_s0 = inlined_call_operand.vmem [shape: f32[16,32], index: 0, kind: input, shape index: {}]   ;;  %s476_s1 = inlined_call_operand.vmem [shape: f32[64,32], index: 1, kind: input, shape index: {}]   ;;  %s477_s2 = inlined_call_operand.vmem [shape: f32[64,32], index: 2, kind: input, shape index: {}]   ;;  %s478_s3 = inlined_call_operand.vmem [shape: f32[32,64], index: 3, kind: input, shape index: {}]   ;;  %s479_s4 = inlined_call_operand.hbm [shape: f32[16,32], index: 4, kind: output, shape index: {}]  }
   0x1   :  { %v34_v0 = vld [vmem:[%s476_s1 + $0x38] sm:$0xff]  ;;  %v33_v1 = vld [vmem:[%s476_s1 + $0x30] sm:$0xff]  ;;  %v32_v4 = vld [vmem:[%s476_s1 + $0x28] sm:$0xff] }
   0x2   :  { %263 = vmatpush.xpose.msk.msra.mxu0 %vm22_vm0, %v34_v0  ;;  %291 = vmatpush.xpose.msk.msra.mxu3 %vm22_vm0, %v34_v0  ;;  %v96_v2 = vld [vmem:[%s477_s2 + $0x38] sm:$0xff]  ;;  %v95_v3 = vld [vmem:[%s477_s2 + $0x30] sm:$0xff] }
   0x3   :  { %273 = vmatpush.xpose.msk.msra.mxu1 %vm22_vm0, %v96_v2 }
   0x6   :  { %264 = vmatpush.xpose.msk.msra.mxu0 %vm22_vm0, %v33_v1  ;;  %292 = vmatpush.xpose.msk.msra.mxu3 %vm22_vm0, %v33_v1 }
   0x7   :  { %9 = vsyncpa [#allocation4], 0  ;;  %274 = vmatpush.xpose.msk.msra.mxu1 %vm22_vm0, %v95_v3  ;;  %v94_v5 = vld [vmem:[%s477_s2 + $0x28] sm:$0xff]  ;;  %v31_v6 = vld [vmem:[%s476_s1 + $0x20] sm:$0xff]  ;;  %vm192_vm1 = vcmask 523264   ;;  %v337_v28 = vmov 0.0  }
   0x8   :  { %v93_v7 = vld [vmem:[%s477_s2 + $0x20] sm:$0xff]  ;;  %v30_v8 = vld [vmem:[%s476_s1 + $0x18] sm:$0xff]  ;;  %v29_v10 = vld [vmem:[%s476_s1 + $0x10] sm:$0xff]  ;;  %23 = vst.msk [vmem:[#allocation2] sm:$0xff] %vm22_vm0, %v337_v28  ;;  %s251_s7 = sshll.u32 %s479_s4, 4  ;;  %s339_s8 = smov 128   ;;  %s252_s7 = int_to_ptr.hbm [resolvable:$true] %s251_s7 }
   0x9   :  { %v92_v9 = vld [vmem:[%s477_s2 + $0x18] sm:$0xff]  ;;  %v91_v11 = vld [vmem:[%s477_s2 + $0x10] sm:$0xff]  ;;  %v28_v12 = vld [vmem:[%s476_s1 + $0x8] sm:$0xff]  ;;  %24 = vst.msk [vmem:[#allocation2 + $0x8] sm:$0xff] %vm22_vm0, %v337_v28  ;;  %s340_s9 = smov 8  }
   0xa   :  { %265 = vmatpush.xpose.msk.msra.mxu0 %vm22_vm0, %v32_v4  ;;  %293 = vmatpush.xpose.msk.msra.mxu3 %vm22_vm0, %v32_v4  ;;  %v90_v13 = vld [vmem:[%s477_s2 + $0x8] sm:$0xff]  ;;  %v27_v14 = vld [vmem:[%s476_s1] sm:$0xff]  ;;  %v191_v18 = vld [vmem:[%s478_s3 + $0x18] sm:$0xff] }
   0xb   :  { %275 = vmatpush.xpose.msk.msra.mxu1 %vm22_vm0, %v94_v5  ;;  %v89_v15 = vld [vmem:[%s477_s2] sm:$0xff]  ;;  %v26_v17 = vld [vmem:[%s475_s0 + $0x8] sm:$0xff]  ;;  %285 = vmatpush.xpose.msk.msra.mxu2 %vm192_vm1, %v191_v18  ;;  %v190_v19 = vld [vmem:[%s478_s3 + $0x10] sm:$0xff] }
   0xc   :  { %v25_v16 = vld [vmem:[%s475_s0] sm:$0xff]  ;;  %v189_v20 = vld [vmem:[%s478_s3 + $0x8] sm:$0xff] }
   0xd   :  { %v188_v21 = vld [vmem:[%s478_s3] sm:$0xff]  ;;  %s338_s3 = smov [#allocation3]  }
   0xe   :  { %266 = vmatpush.xpose.msk.msra.mxu0 %vm22_vm0, %v31_v6  ;;  %294 = vmatpush.xpose.msk.msra.mxu3 %vm22_vm0, %v31_v6  ;;  %s249_s30 = sshll.u32 %s338_s3, 4  ;;  %s250_s30 = int_to_ptr.vmem [resolvable:$true] %s249_s30 }
   0xf   :  { %276 = vmatpush.xpose.msk.msra.mxu1 %vm22_vm0, %v93_v7  ;;  %286 = vmatpush.xpose.msk.msra.mxu2 %vm192_vm1, %v190_v19  ;;  %v186_v57 = vld [vmem:[#allocation2] sm:$0xff] }
  0x10   :  { %v187_v60 = vld [vmem:[#allocation2 + $0x8] sm:$0xff] }
  0x12   :  { %267 = vmatpush.xpose.msk.msra.mxu0 %vm22_vm0, %v30_v8  ;;  %295 = vmatpush.xpose.msk.msra.mxu3 %vm22_vm0, %v30_v8 }
  0x13   :  { %277 = vmatpush.xpose.msk.msra.mxu1 %vm22_vm0, %v92_v9  ;;  %287 = vmatpush.xpose.msk.msra.mxu2 %vm192_vm1, %v189_v20 }
  0x16   :  { %268 = vmatpush.xpose.msk.msra.mxu0 %vm22_vm0, %v29_v10  ;;  %296 = vmatpush.xpose.msk.msra.mxu3 %vm22_vm0, %v29_v10 }
  0x17   :  { %278 = vmatpush.xpose.msk.msra.mxu1 %vm22_vm0, %v91_v11  ;;  %288 = vmatpush.xpose.msk.msra.mxu2 %vm192_vm1, %v188_v21 }
  0x1a   :  { %269 = vmatpush.xpose.msk.msra.mxu0 %vm22_vm0, %v28_v12  ;;  %297 = vmatpush.xpose.msk.msra.mxu3 %vm22_vm0, %v28_v12 }
  0x1b   :  { %279 = vmatpush.xpose.msk.msra.mxu1 %vm22_vm0, %v90_v13 }
  0x1e   :  { %270 = vmatpush.xpose.msk.msra.mxu0 %vm22_vm0, %v27_v14  ;;  %298 = vmatpush.xpose.msk.msra.mxu3 %vm22_vm0, %v27_v14 }
  0x1f   :  { %280 = vmatpush.xpose.msk.msra.mxu1 %vm22_vm0, %v89_v15 }
  0x21   :  { %271 = vmatmul.msk.f32.vlgmr.msra.gmra.mxu0 %vm22_vm0, %v25_v16  ;;  %272 = vmatmul.msk.f32.vlgmr.msra.gmra.mxu3 %vm22_vm0, %v26_v17 }
  0x22   :  { %281 = vmatmul.msk.f32.vlgmr.msra.gmra.mxu1 %vm22_vm0, %v25_v16 }
  0x2a   :  { %282 = vmatmul.msk.f32.gmra.mxu1 %vm22_vm0, %v26_v17 }
  0x9e   :  { %v83_v22 = vpop.f32.mrf.mxu0 }
  0x9f   :  { %v283_v23 = vmul.f32 -1.442695, %v83_v22  ;;  %v138_v41 = vpop.f32.mrf.mxu1 }
  0xa1   :  { %303 = vpow2.f32 %v283_v23 }
  0xa4   :  { %v86_v24 = vpop.f32.mrf.mxu3 }
  0xa5   :  { %v284_v25 = vmul.f32 -1.442695, %v86_v24 }
  0xa7   :  { %v304_v26 = vpop.eup %303  ;;  %305 = vpow2.f32 %v284_v25  ;;  %v141_v55 = vpop.f32.mrf.mxu1 }
  0xa8   :  { %v150_v27 = vadd.f32 1.0, %v304_v26 }
  0xaa   :  { %307 = vrcp.f32 %v150_v27  ;;  %v163_v34 = vand.u32 2147483648, %v150_v27  ;;  %v161_v36 = vand.u32 2147483647, %v150_v27  ;;  %vm157_vm3 = vweird.f32 %v150_v27 }
  0xac   :  { %v164_v40 = vor.u32 1.1754944e-38, %v163_v34  ;;  %vm162_vm5 = vcmp.eq.f32.partialorder %v161_v36, 8.507059e+37 }
  0xad   :  { %v306_v29 = vpop.eup %305 }
  0xae   :  { %v151_v30 = vadd.f32 1.0, %v306_v29 }
  0xb0   :  { %v308_v31 = vpop.eup %307  ;;  %309 = vrcp.f32 %v151_v30  ;;  %v178_v45 = vand.u32 2147483648, %v151_v30  ;;  %v176_v48 = vand.u32 2147483647, %v151_v30  ;;  %vm172_vm7 = vweird.f32 %v151_v30 }
  0xb1   :  { %v153_v32 = vmul.f32 %v308_v31, %v150_v27  ;;  %vm158_vm2 = vweird.f32 %v308_v31 }
  0xb2   :  { %vm159_vm4 = vmor %vm157_vm3, %vm158_vm2  ;;  %v179_v51 = vor.u32 1.1754944e-38, %v178_v45  ;;  %vm177_vm9 = vcmp.eq.f32.partialorder %v176_v48, 8.507059e+37 }
  0xb3   :  { %v154_v33 = vsub.f32 1.0, %v153_v32 }
  0xb5   :  { %v155_v35 = vmul.f32 %v308_v31, %v154_v33 }
  0xb6   :  { %v310_v37 = vpop.eup %309 }
  0xb7   :  { %v156_v38 = vadd.f32 %v308_v31, %v155_v35  ;;  %v168_v39 = vmul.f32 %v310_v37, %v151_v30  ;;  %vm173_vm6 = vweird.f32 %v310_v37 }
  0xb8   :  { %vm174_vm8 = vmor %vm172_vm7, %vm173_vm6 }
  0xb9   :  { %v160_v42 = vsel %vm159_vm4, %v308_v31, %v156_v38  ;;  %v169_v43 = vsub.f32 1.0, %v168_v39 }
  0xba   :  { %v165_v44 = vsel %vm162_vm5, %v164_v40, %v160_v42 }
  0xbb   :  { %v182_v46 = vmul.f32 %v165_v44, %v83_v22  ;;  %v170_v47 = vmul.f32 %v310_v37, %v169_v43 }
  0xbd   :  { %v171_v49 = vadd.f32 %v310_v37, %v170_v47  ;;  %v184_v50 = vmul.f32 %v182_v46, %v138_v41 }
  0xbf   :  { %v175_v52 = vsel %vm174_vm8, %v310_v37, %v171_v49  ;;  %289 = vmatmul.msk.f32.vlgmr.msra.gmra.mxu2 %vm192_vm1, %v184_v50 }
  0xc0   :  { %v180_v53 = vsel %vm177_vm9, %v179_v51, %v175_v52 }
  0xc1   :  { %v183_v54 = vmul.f32 %v180_v53, %v86_v24 }
  0xc3   :  { %v185_v56 = vmul.f32 %v183_v54, %v141_v55 }
  0xc7   :  { %290 = vmatmul.msk.f32.gmra.mxu2 %vm192_vm1, %v185_v56 }
 0x142   :  { %v228_v58 = vpop.f32.mrf.mxu2 }
 0x143   :  { %v234_v59 = vadd.f32 %v228_v58, %v186_v57 }
 0x145   :  { %236 = vst.msk [vmem:[#allocation2] sm:$0xff] %vm22_vm0, %v234_v59 }
 0x14a   :  { %v231_v61 = vpop.f32.mrf.mxu2 }
 0x14b   :  { %v235_v62 = vadd.f32 %v231_v61, %v187_v60 }
 0x14c   :  { %v241_v63 = vld [vmem:[#allocation2] sm:$0xff] }
 0x14d   :  { %237 = vst.msk [vmem:[#allocation2 + $0x8] sm:$0xff] %vm22_vm0, %v235_v62 }
 0x14e   :  { %243 = vst.msk [vmem:[#allocation3] sm:$0xff] %vm22_vm0, %v241_v63 }
 0x154   :  { %v242_v0 = vld [vmem:[#allocation2 + $0x8] sm:$0xff] }
 0x155   :  { %244 = vst.msk [vmem:[#allocation3 + $0x8] sm:$0xff] %vm22_vm0, %v242_v0 }
 0x156   :  { %257 = dma.vmem_to_hbm [thread:$0]  %s250_s30, 256, %s252_s7, [#allocation4], %s339_s8, %s339_s8, %s340_s9  }
 0x157   :  { %335 = dma.done.wait [#allocation4], 256  }
 0x158   :  { %336 = vsyncadd [#allocation4], 4294967040 }
 0x159   :  { %262 = vsyncpa [#allocation4], 1 }

</bundles_post_ra>
